<compile_context>
chip_gen: v5e
topology: v5e:2x2
jax: 0.10.0
libtpu: 0.0.40
codegen_flags: <defaults>
</compile_context>

<pallas_src>
import functools

import jax
import jax.numpy as jnp
from jax.experimental import pallas as pl
from jax.experimental.pallas import tpu as pltpu


def _round_up(x, m):
    return ((x + m - 1) // m) * m


def _news_encoder_kernel(title_ref,   # (Bt, T_pad, E)  bf16 padded title embeddings
                         convw_ref,   # (W*E, F)        bf16 fused conv weight
                         convb_ref,   # (1, F)          f32  conv bias
                         attw_ref,    # (F, Q)          bf16 attention linear W^T
                         attb_ref,    # (1, Q)          f32  attention linear bias
                         attq_ref,    # (Q, 1)          f32  attention query (column)
                         out_ref):    # (Bt, F)         f32  weighted title vectors
    bt, t_pad, e = title_ref.shape
    we, nf = convw_ref.shape
    w_sz = we // e
    t = t_pad - w_sz + 1

    # --- Conv2d(1, F, (W, E), 'same' pad along T): W accumulating matmuls ----
    # K = E per matmul (native MXU depth); no im2col lane-concat temp.
    x = title_ref[...]                                          # (Bt, T_pad, E) bf16
    cw = convw_ref[...]                                         # (W*E, F) bf16
    conv = jnp.zeros((bt * t, nf), jnp.float32)
    for w in range(w_sz):
        lhs = x[:, w:w + t, :].reshape(bt * t, e)               # (Bt*T, E) bf16
        conv = conv + jnp.dot(lhs, cw[w * e:(w + 1) * e, :],
                              preferred_element_type=jnp.float32)
    act = jnp.maximum(conv + convb_ref[...], 0.0)               # ReLU, (Bt*T, F) f32

    # --- AdditiveAttention over the T axis -----------------------------------
    temp = jnp.dot(act.astype(attw_ref.dtype), attw_ref[...],
                   preferred_element_type=jnp.float32)          # (Bt*T, Q) f32
    temp = jnp.tanh(temp + attb_ref[...])

    # Scores via MXU matvec (N=1), then lane-dense (Bt, T) softmax.
    scores = jnp.dot(temp, attq_ref[...],
                     preferred_element_type=jnp.float32)        # (Bt*T, 1) f32
    scores = scores.reshape(bt, t)                              # (Bt, T), T on lanes
    m = jnp.max(scores, axis=1, keepdims=True)                  # (Bt, 1)
    ex = jnp.exp(scores - m)                                    # lane-dense EUP
    denom = jnp.sum(ex, axis=1, keepdims=True)                  # (Bt, 1)
    wts = ex * pl.reciprocal(denom, approx=True)                # (Bt, T)

    # Small relayout (T lanes -> sublanes, ~Bt*T elems) for the weighted sum.
    wts3 = wts.reshape(bt, t, 1)                                # (Bt, T, 1) f32
    act3 = act.reshape(bt, t, nf)                               # (Bt, T, F) f32
    out_ref[...] = jnp.sum(wts3 * act3, axis=1).astype(out_ref.dtype)


def news_encoder_pallas(title_emb_padded, conv_w_fused, conv_b, att_w_fq,
                        att_b, att_q, *, block_b=256):
    """Conv + additive-attention part of NewsEncoder. Returns (B, F) f32."""
    B, T_pad, E = title_emb_padded.shape
    WE, NF = conv_w_fused.shape
    Q = att_w_fq.shape[1]
    W = WE // E
    T = T_pad - W + 1

    # Pad filter / query dims to lane width so the (Bt, NF) output tile and all
    # MXU passes stay lane-dense (matters for LSTUR defaults NF=300, Q=200).
    NFp = _round_up(NF, 128)
    Qp = _round_up(Q, 128)
    if NFp != NF:
        conv_w_fused = jnp.pad(conv_w_fused, ((0, 0), (0, NFp - NF)))
        conv_b = jnp.pad(conv_b, (0, NFp - NF))
        att_w_fq = jnp.pad(att_w_fq, ((0, NFp - NF), (0, 0)))
    if Qp != Q:
        att_w_fq = jnp.pad(att_w_fq, ((0, 0), (0, Qp - Q)))
        att_b = jnp.pad(att_b, (0, Qp - Q))
        att_q = jnp.pad(att_q, (0, Qp - Q))

    # Batch tiling: sublane-aligned blocks; >= 2 grid steps when B >= 16 so the
    # parallel batch axis can be sharded across both v7x TensorCores.
    bt = max(1, min(block_b, B))
    if bt < B:
        bt = max(8, (bt // 8) * 8)
    if B >= 16:
        bt = min(bt, _round_up(-(-B // 2), 8))
    n_blocks = pl.cdiv(B, bt)
    B_pad = n_blocks * bt

    title_bf16 = title_emb_padded.astype(jnp.bfloat16)
    if B_pad != B:
        title_bf16 = jnp.pad(title_bf16, ((0, B_pad - B), (0, 0), (0, 0)))

    conv_w_bf16 = conv_w_fused.astype(jnp.bfloat16)
    att_w_bf16 = att_w_fq.astype(jnp.bfloat16)
    conv_b2 = conv_b.reshape(1, NFp).astype(jnp.float32)
    att_b2 = att_b.reshape(1, Qp).astype(jnp.float32)
    att_q2 = att_q.reshape(Qp, 1).astype(jnp.float32)

    cost = pl.CostEstimate(
        flops=(2 * B_pad * T * WE * NFp          # conv matmuls
               + 2 * B_pad * T * NFp * Qp        # attention projection
               + 2 * B_pad * T * Qp              # score matvec
               + 2 * B_pad * T * NFp),           # weighted sum
        transcendentals=B_pad * T * (Qp + 1),
        bytes_accessed=(title_bf16.size * 2 + conv_w_bf16.size * 2
                        + att_w_bf16.size * 2 + (NFp + 2 * Qp) * 4
                        + B_pad * NFp * 4),
    )

    # Weight blocks use a constant index_map -> recognized as revisited and
    # kept VMEM-resident across grid steps (no per-step re-DMA).
    out = pl.pallas_call(
        _news_encoder_kernel,
        out_shape=jax.ShapeDtypeStruct((B_pad, NFp), jnp.float32),
        grid_spec=pltpu.PrefetchScalarGridSpec(
            num_scalar_prefetch=0,
            grid=(n_blocks,),
            in_specs=[
                pl.BlockSpec((bt, T_pad, E), lambda i: (i, 0, 0)),
                pl.BlockSpec((WE, NFp), lambda i: (0, 0)),
                pl.BlockSpec((1, NFp), lambda i: (0, 0)),
                pl.BlockSpec((NFp, Qp), lambda i: (0, 0)),
                pl.BlockSpec((1, Qp), lambda i: (0, 0)),
                pl.BlockSpec((Qp, 1), lambda i: (0, 0)),
            ],
            out_specs=pl.BlockSpec((bt, NFp), lambda i: (i, 0)),
        ),
        compiler_params=pltpu.CompilerParams(
            dimension_semantics=("parallel",),
            vmem_limit_bytes=48 * 1024 * 1024),
        cost_estimate=cost,
    )(title_bf16, conv_w_bf16, conv_b2, att_w_bf16, att_b2, att_q2)
    return out[:B, :NF]


def news_encoder_forward(category, subcategory, title, params, *, window_size,
                         block_b=256):
    """Full NewsEncoder forward: embedding lookups + kernel + concat."""
    cat_vec = jnp.take(params["cat_emb"], category, axis=0)        # (B, F)
    subcat_vec = jnp.take(params["cat_emb"], subcategory, axis=0)  # (B, F)

    # Gather directly from a bf16 table and pad once -> a single (B, T_pad, E)
    # bf16 title array hits HBM (no f32 gather + f32 pad + bf16 cast chain).
    word_emb_bf16 = params["word_emb"].astype(jnp.bfloat16)
    title_emb = jnp.take(word_emb_bf16, title, axis=0)             # (B, T, E) bf16
    pad = (window_size - 1) // 2
    title_padded = jnp.pad(title_emb, ((0, 0), (pad, pad), (0, 0)))

    NF, _, W, E = params["conv_weight"].shape
    # fused conv weight: rows indexed by (w, e) -> (W*E, F)
    conv_w_fused = jnp.transpose(params["conv_weight"][:, 0], (1, 2, 0)).reshape(W * E, NF)

    weighted = news_encoder_pallas(title_padded, conv_w_fused,
                                   params["conv_bias"],
                                   params["att_weight"].T,
                                   params["att_bias"],
                                   params["att_query"],
                                   block_b=block_b)
    return jnp.concatenate([cat_vec, subcat_vec, weighted], axis=1)


def _reference(title_emb, conv_weight, conv_bias, att_weight, att_bias,
               att_query, cat_vec, subcat_vec, pad):
    """Pure-JAX f32 reference mirroring the PyTorch forward (eval mode)."""
    B, T, E = title_emb.shape
    W = conv_weight.shape[2]
    xp = jnp.pad(title_emb, ((0, 0), (pad, pad), (0, 0)))
    conv = jnp.zeros((B, T, conv_weight.shape[0]), jnp.float32)
    for w in range(W):
        conv = conv + jnp.einsum('bte,fe->btf', xp[:, w:w + T, :],
                                 conv_weight[:, 0, w, :])
    conv = conv + conv_bias
    act = jax.nn.relu(conv)                                   # (B, T, F)
    temp = jnp.tanh(jnp.einsum('btf,qf->btq', act, att_weight) + att_bias)
    scores = jnp.einsum('btq,q->bt', temp, att_query)
    wts = jax.nn.softmax(scores, axis=1)
    weighted = jnp.einsum('bt,btf->bf', wts, act)
    return jnp.concatenate([cat_vec, subcat_vec, weighted], axis=1)


if __name__ == "__main__":
    # Small config consistent with the module.
    NUM_WORDS = 50
    NUM_CATEGORIES = 10
    E = 128            # word_embedding_dim
    NF = 128           # num_filters
    Q = 128            # query_vector_dim
    W = 3              # window_size (odd)
    T = 16             # num_words_title
    B = 2              # batch_size
    PAD = (W - 1) // 2

    key = jax.random.PRNGKey(0)
    ks = jax.random.split(key, 10)

    # --- deterministic parameter init (shapes from __init__) ---------------
    word_emb = 0.1 * jax.random.normal(ks[0], (NUM_WORDS, E), jnp.float32)
    word_emb = word_emb.at[0].set(0.0)                     # padding_idx=0
    cat_emb = 0.1 * jax.random.normal(ks[1], (NUM_CATEGORIES, NF), jnp.float32)
    cat_emb = cat_emb.at[0].set(0.0)                       # padding_idx=0
    conv_weight = 0.05 * jax.random.normal(ks[2], (NF, 1, W, E), jnp.float32)
    conv_bias = 0.05 * jax.random.normal(ks[3], (NF,), jnp.float32)
    att_weight = 0.05 * jax.random.normal(ks[4], (Q, NF), jnp.float32)
    att_bias = 0.05 * jax.random.normal(ks[5], (Q,), jnp.float32)
    att_query = jax.random.uniform(ks[6], (Q,), jnp.float32, -0.1, 0.1)

    params = dict(word_emb=word_emb, cat_emb=cat_emb, conv_weight=conv_weight,
                  conv_bias=conv_bias, att_weight=att_weight,
                  att_bias=att_bias, att_query=att_query)

    # --- example inputs -----------------------------------------------------
    category = jax.random.randint(ks[7], (B,), 1, NUM_CATEGORIES)
    subcategory = jax.random.randint(ks[8], (B,), 1, NUM_CATEGORIES)
    title = jax.random.randint(ks[9], (B, T), 0, NUM_WORDS)  # may include pad id 0

    fwd = jax.jit(functools.partial(news_encoder_forward, window_size=W))
    out = fwd(category, subcategory, title, params)
    out = jax.block_until_ready(out)

    # --- reference ----------------------------------------------------------
    cat_vec = jnp.take(cat_emb, category, axis=0)
    subcat_vec = jnp.take(cat_emb, subcategory, axis=0)
    title_emb = jnp.take(word_emb, title, axis=0)
    ref = _reference(title_emb, conv_weight, conv_bias, att_weight, att_bias,
                     att_query, cat_vec, subcat_vec, PAD)
    ref = jax.block_until_ready(ref)

    assert out.shape == (B, 3 * NF)
    max_err = float(jnp.max(jnp.abs(out - ref)))
    assert max_err < 1e-2, f"max abs error too large: {max_err}"
    print("KERNEL_OK")
</pallas_src>

<mosaic_0001>
module attributes {stable_mosaic.version = 11 : i64} {
  func.func @_news_encoder_kernel(%arg0: i32, %arg1: memref<2x18x128xbf16, #tpu.memory_space<vmem>>, %arg2: memref<384x128xbf16, #tpu.memory_space<vmem>>, %arg3: memref<1x128xf32, #tpu.memory_space<vmem>>, %arg4: memref<128x128xbf16, #tpu.memory_space<vmem>>, %arg5: memref<1x128xf32, #tpu.memory_space<vmem>>, %arg6: memref<128x1xf32, #tpu.memory_space<vmem>>, %arg7: memref<2x128xf32, #tpu.memory_space<vmem>>) attributes {dimension_semantics = [#tpu.dimension_semantics<parallel>], iteration_bounds = array<i64: 1>, scalar_prefetch = 0 : i64, scratch_operands = 0 : i64, tpu.core_type = #tpu.core_type<tc>, window_params = [{transform_indices = @transform_0, window_bounds = array<i64: 2, 18, 128>}, {pipeline_mode = #tpu.pipeline_mode<synchronous>, transform_indices = @transform_1, window_bounds = array<i64: 384, 128>}, {pipeline_mode = #tpu.pipeline_mode<synchronous>, transform_indices = @transform_2, window_bounds = array<i64: 1, 128>}, {pipeline_mode = #tpu.pipeline_mode<synchronous>, transform_indices = @transform_3, window_bounds = array<i64: 128, 128>}, {pipeline_mode = #tpu.pipeline_mode<synchronous>, transform_indices = @transform_4, window_bounds = array<i64: 1, 128>}, {pipeline_mode = #tpu.pipeline_mode<synchronous>, transform_indices = @transform_5, window_bounds = array<i64: 128, 1>}, {transform_indices = @transform_6, window_bounds = array<i64: 2, 128>}]} {
    %c0 = arith.constant 0 : index
    %c0_0 = arith.constant 0 : index
    %c0_1 = arith.constant 0 : index
    %0 = vector.load %arg1[%c0, %c0_0, %c0_1] : memref<2x18x128xbf16, #tpu.memory_space<vmem>>, vector<2x18x128xbf16>
    %c0_2 = arith.constant 0 : index
    %c0_3 = arith.constant 0 : index
    %1 = vector.load %arg2[%c0_2, %c0_3] : memref<384x128xbf16, #tpu.memory_space<vmem>>, vector<384x128xbf16>
    %cst = arith.constant 0.000000e+00 : f32
    %2 = vector.broadcast %cst : f32 to vector<32x128xf32>
    %3 = vector.extract_strided_slice %0 {offsets = [0, 0, 0], sizes = [2, 16, 128], strides = [1, 1, 1]} : vector<2x18x128xbf16> to vector<2x16x128xbf16>
    %4 = vector.shape_cast %3 : vector<2x16x128xbf16> to vector<32x128xbf16>
    %5 = vector.extract_strided_slice %1 {offsets = [0, 0], sizes = [128, 128], strides = [1, 1]} : vector<384x128xbf16> to vector<128x128xbf16>
    %cst_4 = arith.constant dense<0.000000e+00> : vector<32x128xf32>
    %6 = tpu.matmul %4, %5, %cst_4 {dimension_numbers = #tpu.dot_dimension_numbers<[1], [0], [0], [1], [0, 0, 1, 1], [], []>} : vector<32x128xbf16>, vector<128x128xbf16>, vector<32x128xf32> -> vector<32x128xf32>
    %7 = arith.addf %2, %6 : vector<32x128xf32>
    %8 = vector.extract_strided_slice %0 {offsets = [0, 1, 0], sizes = [2, 16, 128], strides = [1, 1, 1]} : vector<2x18x128xbf16> to vector<2x16x128xbf16>
    %9 = vector.shape_cast %8 : vector<2x16x128xbf16> to vector<32x128xbf16>
    %10 = vector.extract_strided_slice %1 {offsets = [128, 0], sizes = [128, 128], strides = [1, 1]} : vector<384x128xbf16> to vector<128x128xbf16>
    %cst_5 = arith.constant dense<0.000000e+00> : vector<32x128xf32>
    %11 = tpu.matmul %9, %10, %cst_5 {dimension_numbers = #tpu.dot_dimension_numbers<[1], [0], [0], [1], [0, 0, 1, 1], [], []>} : vector<32x128xbf16>, vector<128x128xbf16>, vector<32x128xf32> -> vector<32x128xf32>
    %12 = arith.addf %7, %11 : vector<32x128xf32>
    %13 = vector.extract_strided_slice %0 {offsets = [0, 2, 0], sizes = [2, 16, 128], strides = [1, 1, 1]} : vector<2x18x128xbf16> to vector<2x16x128xbf16>
    %14 = vector.shape_cast %13 : vector<2x16x128xbf16> to vector<32x128xbf16>
    %15 = vector.extract_strided_slice %1 {offsets = [256, 0], sizes = [128, 128], strides = [1, 1]} : vector<384x128xbf16> to vector<128x128xbf16>
    %cst_6 = arith.constant dense<0.000000e+00> : vector<32x128xf32>
    %16 = tpu.matmul %14, %15, %cst_6 {dimension_numbers = #tpu.dot_dimension_numbers<[1], [0], [0], [1], [0, 0, 1, 1], [], []>} : vector<32x128xbf16>, vector<128x128xbf16>, vector<32x128xf32> -> vector<32x128xf32>
    %17 = arith.addf %12, %16 : vector<32x128xf32>
    %c0_7 = arith.constant 0 : index
    %c0_8 = arith.constant 0 : index
    %18 = vector.load %arg3[%c0_7, %c0_8] : memref<1x128xf32, #tpu.memory_space<vmem>>, vector<1x128xf32>
    %19 = vector.broadcast %18 : vector<1x128xf32> to vector<32x128xf32>
    %20 = arith.addf %17, %19 : vector<32x128xf32>
    %cst_9 = arith.constant 0.000000e+00 : f32
    %21 = vector.broadcast %cst_9 : f32 to vector<32x128xf32>
    %22 = arith.maximumf %20, %21 : vector<32x128xf32>
    %23 = arith.truncf %22 : vector<32x128xf32> to vector<32x128xbf16>
    %c0_10 = arith.constant 0 : index
    %c0_11 = arith.constant 0 : index
    %24 = vector.load %arg4[%c0_10, %c0_11] : memref<128x128xbf16, #tpu.memory_space<vmem>>, vector<128x128xbf16>
    %cst_12 = arith.constant dense<0.000000e+00> : vector<32x128xf32>
    %25 = tpu.matmul %23, %24, %cst_12 {dimension_numbers = #tpu.dot_dimension_numbers<[1], [0], [0], [1], [0, 0, 1, 1], [], []>} : vector<32x128xbf16>, vector<128x128xbf16>, vector<32x128xf32> -> vector<32x128xf32>
    %c0_13 = arith.constant 0 : index
    %c0_14 = arith.constant 0 : index
    %26 = vector.load %arg5[%c0_13, %c0_14] : memref<1x128xf32, #tpu.memory_space<vmem>>, vector<1x128xf32>
    %27 = vector.broadcast %26 : vector<1x128xf32> to vector<32x128xf32>
    %28 = arith.addf %25, %27 : vector<32x128xf32>
    %29 = math.tanh %28 : vector<32x128xf32>
    %c0_15 = arith.constant 0 : index
    %c0_16 = arith.constant 0 : index
    %30 = vector.load %arg6[%c0_15, %c0_16] : memref<128x1xf32, #tpu.memory_space<vmem>>, vector<128x1xf32>
    %cst_17 = arith.constant dense<0.000000e+00> : vector<32x1xf32>
    %31 = tpu.matmul %29, %30, %cst_17 {dimension_numbers = #tpu.dot_dimension_numbers<[1], [0], [0], [1], [0, 0, 1, 1], [], []>} : vector<32x128xf32>, vector<128x1xf32>, vector<32x1xf32> -> vector<32x1xf32>
    %32 = vector.shape_cast %31 : vector<32x1xf32> to vector<2x16xf32>
    %cst_18 = arith.constant dense<0xFF800000> : vector<2xf32>
    %33 = vector.multi_reduction <maximumf>, %32, %cst_18 [1] : vector<2x16xf32> to vector<2xf32>
    %34 = vector.shape_cast %33 : vector<2xf32> to vector<2x1xf32>
    %35 = vector.broadcast %34 : vector<2x1xf32> to vector<2x16xf32>
    %36 = arith.subf %32, %35 : vector<2x16xf32>
    %37 = math.exp %36 : vector<2x16xf32>
    %cst_19 = arith.constant dense<0.000000e+00> : vector<2xf32>
    %38 = vector.multi_reduction <add>, %37, %cst_19 [1] : vector<2x16xf32> to vector<2xf32>
    %39 = vector.shape_cast %38 : vector<2xf32> to vector<2x1xf32>
    %40 = tpu.reciprocal %39 {approx = true} : vector<2x1xf32> -> vector<2x1xf32>
    %41 = vector.broadcast %40 : vector<2x1xf32> to vector<2x16xf32>
    %42 = arith.mulf %37, %41 : vector<2x16xf32>
    %43 = vector.shape_cast %42 : vector<2x16xf32> to vector<2x16x1xf32>
    %44 = vector.shape_cast %22 : vector<32x128xf32> to vector<2x16x128xf32>
    %45 = vector.broadcast %43 : vector<2x16x1xf32> to vector<2x16x128xf32>
    %46 = arith.mulf %45, %44 : vector<2x16x128xf32>
    %cst_20 = arith.constant dense<0.000000e+00> : vector<2x128xf32>
    %47 = vector.multi_reduction <add>, %46, %cst_20 [1] : vector<2x16x128xf32> to vector<2x128xf32>
    %c0_21 = arith.constant 0 : index
    %c0_22 = arith.constant 0 : index
    %48 = vector.load %arg7[%c0_21, %c0_22] : memref<2x128xf32, #tpu.memory_space<vmem>>, vector<2x128xf32>
    tpu.vector_store %arg7[%c0_21, %c0_22], %47 {strides = array<i32>} : memref<2x128xf32, #tpu.memory_space<vmem>>, vector<2x128xf32>,
    return
  }
  func.func @transform_0(%arg0: i32) -> (i32, i32, i32) {
    %c0_i32 = arith.constant 0 : i32
    %c0_i32_0 = arith.constant 0 : i32
    %c0_i32_1 = arith.constant 0 : i32
    return %arg0, %c0_i32, %c0_i32_0 : i32, i32, i32
  }
  func.func @transform_1(%arg0: i32) -> (i32, i32) {
    %c0_i32 = arith.constant 0 : i32
    %c0_i32_0 = arith.constant 0 : i32
    %c0_i32_1 = arith.constant 0 : i32
    return %c0_i32, %c0_i32_0 : i32, i32
  }
  func.func @transform_2(%arg0: i32) -> (i32, i32) {
    %c0_i32 = arith.constant 0 : i32
    %c0_i32_0 = arith.constant 0 : i32
    %c0_i32_1 = arith.constant 0 : i32
    return %c0_i32, %c0_i32_0 : i32, i32
  }
  func.func @transform_3(%arg0: i32) -> (i32, i32) {
    %c0_i32 = arith.constant 0 : i32
    %c0_i32_0 = arith.constant 0 : i32
    %c0_i32_1 = arith.constant 0 : i32
    return %c0_i32, %c0_i32_0 : i32, i32
  }
  func.func @transform_4(%arg0: i32) -> (i32, i32) {
    %c0_i32 = arith.constant 0 : i32
    %c0_i32_0 = arith.constant 0 : i32
    %c0_i32_1 = arith.constant 0 : i32
    return %c0_i32, %c0_i32_0 : i32, i32
  }
  func.func @transform_5(%arg0: i32) -> (i32, i32) {
    %c0_i32 = arith.constant 0 : i32
    %c0_i32_0 = arith.constant 0 : i32
    %c0_i32_1 = arith.constant 0 : i32
    return %c0_i32, %c0_i32_0 : i32, i32
  }
  func.func @transform_6(%arg0: i32) -> (i32, i32) {
    %c0_i32 = arith.constant 0 : i32
    %c0_i32_0 = arith.constant 0 : i32
    return %arg0, %c0_i32 : i32, i32
  }
}

</mosaic_0001>

<bundles_post_ra>
// kernel: news_encoder_forward.1
= control target key start
LH: loop header
LB: loop body
LE: loop exit
PB: predicated region body
PF: predicated region fallthrough
CT: control target
= control target key end

     0   :  { %vm284_vm0 = vcmask 1042432   ;;  %vm285_vm1 = vcmask 1046532   ;;  %vm77_vm2 = vsmask.f32 3328  ;;  %vm78_vm3 = vsmask.f32 7440  ;;  %s1194_s1 = inlined_call_operand.vmem [shape: bf16[384,128], index: 1, kind: input, shape index: {}]   ;;  %s1195_s0 = inlined_call_operand.vmem [shape: bf16[2,18,128], index: 0, kind: input, shape index: {}]   ;;  %s1196_s3 = inlined_call_operand.vmem [shape: bf16[128,128], index: 3, kind: input, shape index: {}]   ;;  %s1197_s2 = inlined_call_operand.vmem [shape: f32[1,128], index: 2, kind: input, shape index: {}]   ;;  %s1198_s4 = inlined_call_operand.vmem [shape: f32[1,128], index: 4, kind: input, shape index: {}]   ;;  %s1199_s5 = inlined_call_operand.vmem [shape: f32[128,1], index: 5, kind: input, shape index: {}]   ;;  %s1200_s6 = inlined_call_operand.vmem [shape: f32[2,128], index: 6, kind: output, shape index: {}]  }
   0x1   :  { %v819_v0 = vld [vmem:[%s1194_s1 + $0x78] sm:$0xff]  ;;  %v818_v3 = vld [vmem:[%s1194_s1 + $0x70] sm:$0xff]  ;;  %v817_v6 = vld [vmem:[%s1194_s1 + $0x68] sm:$0xff]  ;;  %vm551_vm6 = vcmask 130112   ;;  %vm556_vm7 = vcmask 1041409   ;;  %vm559_vm8 = vcmask 123904  }
   0x2   :  { %v811_v1 = vld [vmem:[%s1194_s1 + $0x38] sm:$0xff]  ;;  %184 = vmatpush.bf16.msra.mxu0 %v819_v0  ;;  %v810_v4 = vld [vmem:[%s1194_s1 + $0x30] sm:$0xff]  ;;  %v809_v7 = vld [vmem:[%s1194_s1 + $0x28] sm:$0xff] }
   0x3   :  { %v827_v2 = vld [vmem:[%s1194_s1 + $0xb8] sm:$0xff]  ;;  %263 = vmatpush.bf16.msra.mxu1 %v811_v1  ;;  %v826_v5 = vld [vmem:[%s1194_s1 + $0xb0] sm:$0xff]  ;;  %v825_v8 = vld [vmem:[%s1194_s1 + $0xa8] sm:$0xff] }
   0x4   :  { %357 = vmatpush.bf16.msra.mxu2 %v827_v2  ;;  %v23_v9 = vld [vmem:[%s1195_s0] sm:$0xf]  ;;  %v24_v10 = vld [vmem:[%s1195_s0 + $0x4] sm:$0xf]  ;;  %v25_v18 = vld [vmem:[%s1195_s0 + $0x8] sm:$0x1] }
   0x5   :  { %v81_v11 = vshrl.u32 %v23_v9, 16  ;;  %v84_v12 = vshll.u32 %v23_v9, 16  ;;  %v90_v13 = vshll.u32 %v24_v10, 16  ;;  %v94_v14 = vshrl.u32 %v24_v10, 16  ;;  %v816_v15 = vld [vmem:[%s1194_s1 + $0x60] sm:$0xff]  ;;  %v815_v23 = vld [vmem:[%s1194_s1 + $0x58] sm:$0xff]  ;;  %vm1004_vm4 = vmor %vm284_vm0, %vm285_vm1 }
   0x6   :  { %185 = vmatpush.bf16.msra.mxu0 %v818_v3  ;;  %v808_v16 = vld [vmem:[%s1194_s1 + $0x20] sm:$0xff]  ;;  %v807_v24 = vld [vmem:[%s1194_s1 + $0x18] sm:$0xff]  ;;  %v100_v27 = vshll.u32 %v25_v18, 16  ;;  %v289_v29 = vrot.slane %v24_v10, 5  ;;  %v814_v30 = vld [vmem:[%s1194_s1 + $0x50] sm:$0xff]  ;;  %v736_v32 = vrot.slane %v23_v9, 9 }
   0x7   :  { %264 = vmatpush.bf16.msra.mxu1 %v810_v4  ;;  %v824_v17 = vld [vmem:[%s1194_s1 + $0xa0] sm:$0xff]  ;;  %v83_v19 = vrot.slane %v81_v11, 4  ;;  %v86_v20 = vrot.slane %v84_v12, 5  ;;  %v92_v21 = vrot.slane %v90_v13, 5  ;;  %v96_v22 = vrot.slane %v94_v14, 4  ;;  %v823_v28 = vld [vmem:[%s1194_s1 + $0x98] sm:$0xff]  ;;  %vm1020_vm5 = vmor %vm77_vm2, %vm78_vm3 }
   0x8   :  { %358 = vmatpush.bf16.msra.mxu2 %v826_v5  ;;  %v806_v31 = vld [vmem:[%s1194_s1 + $0x10] sm:$0xff]  ;;  %v102_v35 = vrot.slane %v100_v27, 5  ;;  %v1011_v37 = vld [vmem:[%s1195_s0 + $0xc] sm:$0xf]  ;;  %v835_v38 = vld [vmem:[%s1196_s3 + $0x38] sm:$0xff]  ;;  %v291_v41 = vrot.slane %v289_v29, 4  ;;  %v290_v45 = vsel %vm1004_vm4, %v736_v32, %v289_v29 }
   0x9   :  { %v87_v25 = vor.u32 %v86_v20, %v83_v19  ;;  %v97_v26 = vor.u32 %v96_v22, %v92_v21  ;;  %v822_v39 = vld [vmem:[%s1194_s1 + $0x90] sm:$0xff]  ;;  %v292_v42 = vrot.slane %v25_v18, 5  ;;  %462 = vmatpush.bf16.msra.mxu3 %v835_v38  ;;  %v105_v46 = vshrl.u32 %v1011_v37, 16  ;;  %v813_v48 = vld [vmem:[%s1194_s1 + $0x48] sm:$0xff]  ;;  %v812_v60 = vld [vmem:[%s1194_s1 + $0x40] sm:$0xff] }
   0xa   :  { %186 = vmatpush.bf16.msra.mxu0 %v817_v6  ;;  %v27_v43 = vld [vmem:[%s1195_s0 + $0x10] sm:$0xf]  ;;  %v108_v47 = vshll.u32 %v1011_v37, 16  ;;  %v805_v49 = vld [vmem:[%s1194_s1 + $0x8] sm:$0xff]  ;;  %v301_v58 = vunpack.c.l.b16 %v290_v45  ;;  %v804_v61 = vld [vmem:[%s1194_s1] sm:$0xff]  ;;  %v737_v14 = vrot.slane %v1011_v37, 9 }
   0xb   :  { %265 = vmatpush.bf16.msra.mxu1 %v809_v7  ;;  %v88_v33 = vrot.slane %v87_v25, 4  ;;  %v98_v34 = vrot.slane %v97_v26, 4  ;;  %v834_v44 = vld [vmem:[%s1196_s3 + $0x30] sm:$0xff]  ;;  %v114_v52 = vshll.u32 %v27_v43, 16  ;;  %v118_v53 = vshrl.u32 %v27_v43, 16  ;;  %v821_v54 = vld [vmem:[%s1194_s1 + $0x88] sm:$0xff] }
   0xc   :  { %359 = vmatpush.bf16.msra.mxu2 %v825_v8  ;;  %v293_v55 = vsel %vm1004_vm4, %v291_v41, %v292_v42  ;;  %v107_v59 = vrot.slane %v105_v46, 4  ;;  %v110_v63 = vrot.slane %v108_v47, 5  ;;  %v820_v2 = vld [vmem:[%s1194_s1 + $0x80] sm:$0xff]  ;;  %v28_v3 = vld [vmem:[%s1195_s0 + $0x14] sm:$0x1]  ;;  %v296_v10 = vrot.slane %v27_v43, 5 }
   0xd   :  { %v93_v50 = vsel %vm1020_vm5, %v88_v33, %v92_v21  ;;  %v103_v51 = vsel %vm1020_vm5, %v98_v34, %v102_v35  ;;  %463 = vmatpush.bf16.msra.mxu3 %v834_v44  ;;  %v302_v62 = vunpack.c.l.b16 %v293_v55  ;;  %v116_v0 = vrot.slane %v114_v52, 5  ;;  %v802_v5 = vld [vmem:[%s1195_s0] sm:$0xff]  ;;  %v803_v26 = vld [vmem:[%s1195_s0 + $0xc] sm:$0xff]  ;;  %v500_v40 = vld [vmem:[%s1199_s5 + $0x78] sm:$0xff] }
   0xe   :  { %187 = vmatpush.bf16.msra.mxu0 %v816_v15  ;;  %v128_v56 = vunpack.c.l.b16 %v93_v50  ;;  %v129_v57 = vunpack.c.l.b16 %v103_v51  ;;  %v120_v1 = vrot.slane %v118_v53, 4  ;;  %v111_v7 = vor.u32 %v110_v63, %v107_v59  ;;  %v832_v29 = vld [vmem:[%s1196_s3 + $0x20] sm:$0xff]  ;;  %v829_v32 = vld [vmem:[%s1196_s3 + $0x8] sm:$0xff]  ;;  %v499_v41 = vld [vmem:[%s1199_s5 + $0x70] sm:$0xff] }
   0xf   :  { %266 = vmatpush.bf16.msra.mxu1 %v808_v16  ;;  %v305_v6 = vpack.c.b16 %v302_v62, %v301_v58  ;;  %v124_v9 = vshll.u32 %v28_v3, 16  ;;  %v298_v15 = vrot.slane %v296_v10, 4  ;;  %v299_v16 = vrot.slane %v28_v3, 5  ;;  %v828_v33 = vld [vmem:[%s1196_s3] sm:$0xff]  ;;  %v498_v42 = vld [vmem:[%s1199_s5 + $0x68] sm:$0xff]  ;;  %v496_v47 = vld [vmem:[%s1199_s5 + $0x58] sm:$0xff] }
  0x10   :  { %360 = vmatpush.bf16.msra.mxu2 %v824_v17  ;;  %v132_v4 = vpack.c.b16 %v129_v57, %v128_v56  ;;  %v121_v8 = vor.u32 %v120_v1, %v116_v0  ;;  %v112_v11 = vrot.slane %v111_v7, 4  ;;  %v297_v19 = vsel %vm1004_vm4, %v737_v14, %v296_v10  ;;  %v1106_v44 = vld [vmem:[%s1197_s2] ss:$0 sm:$0xff]  ;;  %v495_v51 = vld [vmem:[%s1199_s5 + $0x50] sm:$0xff]  ;;  %v494_v55 = vld [vmem:[%s1199_s5 + $0x48] sm:$0xff] }
  0x11   :  { %v126_v13 = vrot.slane %v124_v9, 5  ;;  %v300_v20 = vsel %vm1004_vm4, %v298_v15, %v299_v16  ;;  %v497_v45 = vld [vmem:[%s1199_s5 + $0x60] sm:$0xff]  ;;  %v491_v63 = vld [vmem:[%s1199_s5 + $0x30] sm:$0xff]  ;;  %v486_v15 = vld [vmem:[%s1199_s5 + $0x8] sm:$0xff] }
  0x12   :  { %188 = vmatpush.bf16.msra.mxu0 %v815_v23  ;;  %v122_v12 = vrot.slane %v121_v8, 4  ;;  %v117_v17 = vsel %vm1020_vm5, %v112_v11, %v116_v0  ;;  %v303_v23 = vunpack.c.l.b16 %v297_v19  ;;  %v493_v58 = vld [vmem:[%s1199_s5 + $0x40] sm:$0xff]  ;;  %v490_v0 = vld [vmem:[%s1199_s5 + $0x28] sm:$0xff]  ;;  %v487_v14 = vld [vmem:[%s1199_s5 + $0x10] sm:$0xff] }
  0x13   :  { %267 = vmatpush.bf16.msra.mxu1 %v807_v24  ;;  %v130_v21 = vunpack.c.l.b16 %v117_v17  ;;  %v304_v24 = vunpack.c.l.b16 %v300_v20  ;;  %v485_v16 = vld [vmem:[%s1199_s5] sm:$0xff]  ;;  %v908_v20 = vmov 0  }
  0x14   :  { %361 = vmatpush.bf16.msra.mxu2 %v823_v28  ;;  %v127_v18 = vsel %vm1020_vm5, %v122_v12, %v126_v13  ;;  %v833_v28 = vld [vmem:[%s1196_s3 + $0x28] sm:$0xff]  ;;  %v489_v12 = vld [vmem:[%s1199_s5 + $0x20] sm:$0xff]  ;;  %v488_v13 = vld [vmem:[%s1199_s5 + $0x18] sm:$0xff]  ;;  %885 = vset.pattern.permute.xlu0 %v908_v20 }
  0x15   :  { %v131_v22 = vunpack.c.l.b16 %v127_v18  ;;  %v306_v27 = vpack.c.b16 %v304_v24, %v303_v23  ;;  %464 = vmatpush.bf16.msra.mxu3 %v833_v28  ;;  %v889_v17 = vld [vmem:[%s1198_s4] ss:$0 sm:$0xff]  ;;  %886 = vset.pattern.permute.xlu1 %v908_v20 }
  0x16   :  { %189 = vmatpush.bf16.msra.mxu0 %v814_v30  ;;  %v831_v30 = vld [vmem:[%s1196_s3 + $0x18] sm:$0xff]  ;;  %887 = vset.pattern.permute.xlu2 %v908_v20 }
  0x17   :  { %268 = vmatpush.bf16.msra.mxu1 %v806_v31  ;;  %v133_v25 = vpack.c.b16 %v131_v22, %v130_v21  ;;  %v830_v31 = vld [vmem:[%s1196_s3 + $0x10] sm:$0xff] }
  0x18   :  { %362 = vmatpush.bf16.msra.mxu2 %v822_v39 }
  0x19   :  { %465 = vmatpush.bf16.msra.mxu3 %v832_v29 }
  0x1a   :  { %190 = vmatpush.bf16.msra.mxu0 %v813_v48 }
  0x1b   :  { %269 = vmatpush.bf16.msra.mxu1 %v805_v49 }
  0x1c   :  { %363 = vmatpush.bf16.msra.mxu2 %v821_v54 }
  0x1d   :  { %466 = vmatpush.bf16.msra.mxu3 %v831_v30 }
  0x1e   :  { %191 = vmatpush.bf16.msra.mxu0 %v812_v60  ;;  %v492_v60 = vld [vmem:[%s1199_s5 + $0x38] sm:$0xff] }
  0x1f   :  { %270 = vmatpush.bf16.msra.mxu1 %v804_v61 }
  0x20   :  { %364 = vmatpush.bf16.msra.mxu2 %v820_v2 }
  0x21   :  { %192 = vmatmul.bf16.vlgmr.msra.gmra.mxu0 %v132_v4  ;;  %467 = vmatpush.bf16.msra.mxu3 %v830_v31 }
  0x22   :  { %271 = vmatmul.bf16.vlgmr.msra.gmra.mxu1 %v802_v5  ;;  %501 = vmatpush.msrb.mxu0 %v500_v40 }
  0x23   :  { %365 = vmatmul.bf16.vlgmr.msra.gmra.mxu2 %v305_v6  ;;  %836 = vmatpush.msrb.mxu1 %v500_v40 }
  0x24   :  { %837 = vmatpush.msrb.mxu2 %v500_v40  ;;  %502 = vmatpush.msrb.mxu0 %v499_v41 }
  0x25   :  { %468 = vmatpush.bf16.msra.mxu3 %v829_v32  ;;  %839 = vmatpush.msrb.mxu1 %v499_v41 }
  0x26   :  { %840 = vmatpush.msrb.mxu2 %v499_v41  ;;  %503 = vmatpush.msrb.mxu0 %v498_v42 }
  0x27   :  { %842 = vmatpush.msrb.mxu1 %v498_v42 }
  0x28   :  { %843 = vmatpush.msrb.mxu2 %v498_v42  ;;  %504 = vmatpush.msrb.mxu0 %v497_v45 }
  0x29   :  { %469 = vmatpush.bf16.msra.mxu3 %v828_v33  ;;  %845 = vmatpush.msrb.mxu1 %v497_v45 }
  0x2a   :  { %846 = vmatpush.msrb.mxu2 %v497_v45  ;;  %505 = vmatpush.msrb.mxu0 %v496_v47 }
  0x2b   :  { %848 = vmatpush.msrb.mxu1 %v496_v47 }
  0x2c   :  { %849 = vmatpush.msrb.mxu2 %v496_v47  ;;  %506 = vmatpush.msrb.mxu0 %v495_v51 }
  0x2d   :  { %838 = vmatpush.msrb.mxu3 %v500_v40  ;;  %851 = vmatpush.msrb.mxu1 %v495_v51 }
  0x2e   :  { %852 = vmatpush.msrb.mxu2 %v495_v51  ;;  %507 = vmatpush.msrb.mxu0 %v494_v55 }
  0x2f   :  { %841 = vmatpush.msrb.mxu3 %v499_v41  ;;  %854 = vmatpush.msrb.mxu1 %v494_v55 }
  0x30   :  { %855 = vmatpush.msrb.mxu2 %v494_v55  ;;  %508 = vmatpush.msrb.mxu0 %v493_v58 }
  0x31   :  { %197 = vmatmul.bf16.gmra.mxu0 %v133_v25  ;;  %844 = vmatpush.msrb.mxu3 %v498_v42 }
  0x32   :  { %276 = vmatmul.bf16.gmra.mxu1 %v803_v26  ;;  %858 = vmatpush.msrb.mxu2 %v493_v58 }
  0x33   :  { %370 = vmatmul.bf16.gmra.mxu2 %v306_v27  ;;  %847 = vmatpush.msrb.mxu3 %v497_v45 }
  0x34   :  { %857 = vmatpush.msrb.mxu1 %v493_v58  ;;  %509 = vmatpush.msrb.mxu0 %v492_v60 }
  0x35   :  { %850 = vmatpush.msrb.mxu3 %v496_v47  ;;  %861 = vmatpush.msrb.mxu2 %v492_v60 }
  0x36   :  { %860 = vmatpush.msrb.mxu1 %v492_v60  ;;  %510 = vmatpush.msrb.mxu0 %v491_v63 }
  0x37   :  { %853 = vmatpush.msrb.mxu3 %v495_v51  ;;  %864 = vmatpush.msrb.mxu2 %v491_v63 }
  0x38   :  { %863 = vmatpush.msrb.mxu1 %v491_v63  ;;  %511 = vmatpush.msrb.mxu0 %v490_v0 }
  0x39   :  { %856 = vmatpush.msrb.mxu3 %v494_v55  ;;  %867 = vmatpush.msrb.mxu2 %v490_v0 }
  0x3a   :  { %866 = vmatpush.msrb.mxu1 %v490_v0  ;;  %512 = vmatpush.msrb.mxu0 %v489_v12 }
  0x3b   :  { %859 = vmatpush.msrb.mxu3 %v493_v58  ;;  %870 = vmatpush.msrb.mxu2 %v489_v12 }
  0x3c   :  { %869 = vmatpush.msrb.mxu1 %v489_v12  ;;  %513 = vmatpush.msrb.mxu0 %v488_v13 }
  0x3d   :  { %862 = vmatpush.msrb.mxu3 %v492_v60  ;;  %873 = vmatpush.msrb.mxu2 %v488_v13 }
  0x3e   :  { %872 = vmatpush.msrb.mxu1 %v488_v13  ;;  %514 = vmatpush.msrb.mxu0 %v487_v14 }
  0x3f   :  { %865 = vmatpush.msrb.mxu3 %v491_v63  ;;  %876 = vmatpush.msrb.mxu2 %v487_v14 }
  0x40   :  { %875 = vmatpush.msrb.mxu1 %v487_v14  ;;  %515 = vmatpush.msrb.mxu0 %v486_v15 }
  0x41   :  { %868 = vmatpush.msrb.mxu3 %v490_v0  ;;  %879 = vmatpush.msrb.mxu2 %v486_v15 }
  0x42   :  { %878 = vmatpush.msrb.mxu1 %v486_v15  ;;  %516 = vmatpush.msrb.mxu0 %v485_v16 }
  0x43   :  { %871 = vmatpush.msrb.mxu3 %v489_v12  ;;  %882 = vmatpush.msrb.mxu2 %v485_v16 }
  0x44   :  { %881 = vmatpush.msrb.mxu1 %v485_v16 }
  0x45   :  { %874 = vmatpush.msrb.mxu3 %v488_v13 }
  0x47   :  { %877 = vmatpush.msrb.mxu3 %v487_v14 }
  0x49   :  { %880 = vmatpush.msrb.mxu3 %v486_v15 }
  0x4b   :  { %883 = vmatpush.msrb.mxu3 %v485_v16 }
  0x9e   :  { %v193_v34 = vpop.f32.mrf.mxu0 }
  0x9f   :  { %v272_v35 = vpop.f32.mrf.mxu1 }
  0xa0   :  { %v273_v37 = vadd.f32 %v272_v35, %v193_v34 }
  0xa6   :  { %v366_v36 = vpop.f32.mrf.mxu2  ;;  %v195_v38 = vpop.f32.mrf.mxu0 }
  0xa7   :  { %v274_v39 = vpop.f32.mrf.mxu1  ;;  %v376_v43 = vadd.f32 %v366_v36, %v273_v37  ;;  %v546_v36 = vlaneseq }
  0xa8   :  { %v275_v46 = vadd.f32 %v274_v39, %v195_v38 }
  0xa9   :  { %v1115_v49 = vadd.f32 %v1106_v44, %v376_v43  ;;  %v547_v38 = vand.u32 127, %v546_v36 }
  0xab   :  { %v388_v56 = vmax.f32 %v1115_v49, 0.0  ;;  %v549_v39 = vadd.s32 4294967288, %v547_v38 }
  0xae   :  { %v368_v48 = vpop.f32.mrf.mxu2  ;;  %v198_v52 = vpop.f32.mrf.mxu0 }
  0xaf   :  { %v377_v50 = vadd.f32 %v368_v48, %v275_v46  ;;  %v277_v53 = vpop.f32.mrf.mxu1 }
  0xb0   :  { %v278_v62 = vadd.f32 %v277_v53, %v198_v52 }
  0xb1   :  { %v1121_v54 = vadd.f32 %v1106_v44, %v377_v50 }
  0xb3   :  { %v389_v57 = vmax.f32 %v1121_v54, 0.0 }
  0xb5   :  { %v392_v59 = vpack.c.bf16 %v389_v57, %v388_v56 }
  0xb6   :  { %v371_v61 = vpop.f32.mrf.mxu2  ;;  %v200_v1 = vpop.f32.mrf.mxu0 }
  0xb7   :  { %470 = vmatmul.bf16.vlgmr.msra.gmra.mxu3 %v392_v59  ;;  %v279_v2 = vpop.f32.mrf.mxu1  ;;  %v378_v3 = vadd.f32 %v371_v61, %v278_v62 }
  0xb8   :  { %v280_v4 = vadd.f32 %v279_v2, %v200_v1 }
  0xb9   :  { %v1145_v6 = vadd.f32 %v1106_v44, %v378_v3 }
  0xbb   :  { %v390_v9 = vmax.f32 %v1145_v6, 0.0 }
  0xbe   :  { %v373_v5 = vpop.f32.mrf.mxu2 }
  0xbf   :  { %v379_v7 = vadd.f32 %v373_v5, %v280_v4 }
  0xc1   :  { %v1148_v8 = vadd.f32 %v1106_v44, %v379_v7 }
  0xc3   :  { %v391_v10 = vmax.f32 %v1148_v8, 0.0 }
  0xc5   :  { %v393_v11 = vpack.c.bf16 %v391_v10, %v390_v9 }
  0xc7   :  { %475 = vmatmul.bf16.gmra.mxu3 %v393_v11 }
 0x13a   :  { %v471_v18 = vpop.f32.mrf.mxu3 }
 0x13b   :  { %v472_v19 = vadd.f32 %v889_v17, %v471_v18 }
 0x13d   :  { %890 = vtanh.f32 %v472_v19 }
 0x142   :  { %v473_v21 = vpop.f32.mrf.mxu3 }
 0x143   :  { %v891_v22 = vpop.eup %890  ;;  %v474_v23 = vadd.f32 %v889_v17, %v473_v21 }
 0x144   :  { %517 = vmatmul.f32.vlgmr.msrb.gmra.mxu0 %v891_v22 }
 0x145   :  { %892 = vtanh.f32 %v474_v23 }
 0x14a   :  { %v476_v24 = vpop.f32.mrf.mxu3 }
 0x14b   :  { %v893_v25 = vpop.eup %892  ;;  %v477_v26 = vadd.f32 %v889_v17, %v476_v24 }
 0x14c   :  { %520 = vmatmul.f32.vlgmr.msrb.gmra.mxu1 %v893_v25 }
 0x14d   :  { %894 = vtanh.f32 %v477_v26 }
 0x152   :  { %v478_v27 = vpop.f32.mrf.mxu3 }
 0x153   :  { %v895_v28 = vpop.eup %894  ;;  %v479_v29 = vadd.f32 %v889_v17, %v478_v27 }
 0x154   :  { %523 = vmatmul.f32.vlgmr.msrb.gmra.mxu2 %v895_v28 }
 0x155   :  { %896 = vtanh.f32 %v479_v29 }
 0x15b   :  { %v897_v30 = vpop.eup %896 }
 0x15c   :  { %526 = vmatmul.f32.vlgmr.msrb.gmra.mxu3 %v897_v30 }
 0x1c1   :  { %v518_v31 = vpop.f32.mrf.mxu0 }
 0x1c2   :  { %535 = vperm.xlu0 %885, %v518_v31  }
 0x1c9   :  { %v521_v32 = vpop.f32.mrf.mxu1 }
 0x1ca   :  { %538 = vperm.xlu0 %885, %v521_v32  }
 0x1d7   :  { %v524_v33 = vpop.f32.mrf.mxu2 }
 0x1d8   :  { %541 = vperm.xlu1 %886, %v524_v33  }
 0x1df   :  { %v527_v34 = vpop.f32.mrf.mxu3 }
 0x1e0   :  { %544 = vperm.xlu1 %886, %v527_v34  }
 0x234   :  { %v536_v35 = vpop.permute.xlu0 %535 }
 0x235   :  { %v548_v43 = vperm.slane %v536_v35, %v547_v38 }
 0x23c   :  { %v539_v40 = vpop.permute.xlu0 %538 }
 0x23d   :  { %v550_v41 = vperm.slane %v539_v40, %v549_v39 }
 0x23f   :  { %v552_v46 = vsel %vm551_vm6, %v550_v41, %v548_v43 }
 0x24a   :  { %v542_v37 = vpop.permute.xlu1 %541 }
 0x24b   :  { %v553_v44 = vperm.slane %v542_v37, %v547_v38 }
 0x252   :  { %v545_v42 = vpop.permute.xlu1 %544 }
 0x253   :  { %v554_v45 = vperm.slane %v545_v42, %v549_v39 }
 0x255   :  { %v555_v47 = vsel %vm551_vm6, %v554_v45, %v553_v44 }
 0x256   :  { %v557_v48 = vsel %vm556_vm7, %v555_v47, %v552_v46 }
 0x257   :  { %v560_v50 = vsel %vm559_vm8, %v557_v48, -inf }
 0x258   :  { %561 = vmax.xlane.f32.xlu2 %v560_v50 }
 0x2cb   :  { %v562_v51 = vpop.xlane.xlu2 %561 }
 0x2cc   :  { %v564_v52 = vperm.slane %v562_v51, 0  ;;  %v565_v53 = vperm.slane %v562_v51, 1 }
 0x2ce   :  { %v568_v55 = vsub.f32 %v518_v31, %v564_v52  ;;  %v569_v58 = vsub.f32 %v521_v32, %v564_v52  ;;  %v570_v59 = vsub.f32 %v524_v33, %v565_v53  ;;  %v571_v63 = vsub.f32 %v527_v34, %v565_v53 }
 0x2d0   :  { %v572_v60 = vmul.f32 1.442695, %v568_v55  ;;  %v574_v61 = vmul.f32 1.442695, %v569_v58  ;;  %v576_v62 = vmul.f32 1.442695, %v570_v59 }
 0x2d1   :  { %v578_v0 = vmul.f32 1.442695, %v571_v63 }
 0x2d2   :  { %898 = vpow2.f32 %v572_v60 }
 0x2d3   :  { %900 = vpow2.f32 %v574_v61 }
 0x2d4   :  { %902 = vpow2.f32 %v576_v62 }
 0x2d5   :  { %904 = vpow2.f32 %v578_v0 }
 0x2d8   :  { %v899_v1 = vpop.eup %898 }
 0x2d9   :  { %v901_v2 = vpop.eup %900  ;;  %585 = vperm.xlu2 %887, %v899_v1  }
 0x2da   :  { %v903_v3 = vpop.eup %902  ;;  %588 = vperm.xlu0 %885, %v901_v2  }
 0x2db   :  { %591 = vperm.xlu1 %886, %v903_v3   ;;  %v905_v4 = vpop.eup %904 }
 0x2e2   :  { %594 = vperm.xlu0 %885, %v905_v4  }
 0x333   :  { %v586_v7 = vpop.permute.xlu2 %585 }
 0x334   :  { %v596_v14 = vperm.slane %v586_v7, %v547_v38 }
 0x34c   :  { %v589_v5 = vpop.permute.xlu0 %588 }
 0x34d   :  { %v592_v11 = vpop.permute.xlu1 %591  ;;  %v597_v12 = vperm.slane %v589_v5, %v549_v39 }
 0x34e   :  { %v599_v15 = vperm.slane %v592_v11, %v547_v38 }
 0x34f   :  { %v598_v17 = vsel %vm551_vm6, %v597_v12, %v596_v14 }
 0x354   :  { %v595_v13 = vpop.permute.xlu0 %594 }
 0x355   :  { %v600_v16 = vperm.slane %v595_v13, %v549_v39 }
 0x357   :  { %v601_v18 = vsel %vm551_vm6, %v600_v16, %v599_v15 }
 0x358   :  { %v602_v19 = vsel %vm556_vm7, %v601_v18, %v598_v17 }
 0x359   :  { %v604_v20 = vsel %vm559_vm8, %v602_v19, 0.0 }
 0x35a   :  { %605 = vadd.xlane.f32.xlu1 %v604_v20 }
 0x3cd   :  { %v606_v21 = vpop.xlane.xlu1 %605 }
 0x3ce   :  { %906 = vrcp.f32 %v606_v21 }
 0x3d4   :  { %v907_v22 = vpop.eup %906 }
 0x3d5   :  { %v609_v23 = vperm.slane %v907_v22, 0  ;;  %v610_v26 = vperm.slane %v907_v22, 1 }
 0x3d7   :  { %v614_v24 = vmul.f32 %v901_v2, %v609_v23  ;;  %v613_v25 = vmul.f32 %v899_v1, %v609_v23  ;;  %v616_v27 = vmul.f32 %v905_v4, %v610_v26  ;;  %v615_v28 = vmul.f32 %v903_v3, %v610_v26 }
 0x3d9   :  { %624 = vperm.xlu2 %887, %v614_v24   ;;  %619 = vperm.xlu0 %885, %v613_v25  }
 0x3e1   :  { %634 = vperm.xlu2 %887, %v616_v27   ;;  %629 = vperm.xlu0 %885, %v615_v28  }
 0x433   :  { %v625_v29 = vpop.permute.xlu2 %624 }
 0x434   :  { %v638_v31 = vmul.f32 %v625_v29, %v389_v57 }
 0x43b   :  { %v635_v35 = vpop.permute.xlu2 %634 }
 0x43c   :  { %v640_v38 = vmul.f32 %v635_v35, %v391_v10 }
 0x44b   :  { %v620_v30 = vpop.permute.xlu0 %619 }
 0x44c   :  { %v637_v32 = vmul.f32 %v620_v30, %v388_v56 }
 0x44e   :  { %v641_v33 = vadd.f32 %v638_v31, %v637_v32 }
 0x450   :  { %v642_v34 = vrot.slane %v641_v33, 4 }
 0x452   :  { %v643_v36 = vadd.f32 %v642_v34, %v641_v33 }
 0x453   :  { %v630_v37 = vpop.permute.xlu0 %629 }
 0x454   :  { %v639_v39 = vmul.f32 %v630_v37, %v390_v9  ;;  %v644_v40 = vrot.slane %v643_v36, 2 }
 0x456   :  { %v648_v41 = vadd.f32 %v640_v38, %v639_v39  ;;  %v645_v43 = vadd.f32 %v644_v40, %v643_v36 }
 0x458   :  { %v649_v42 = vrot.slane %v648_v41, 4  ;;  %v646_v44 = vrot.slane %v645_v43, 1 }
 0x45a   :  { %v650_v54 = vadd.f32 %v649_v42, %v648_v41  ;;  %v647_v45 = vadd.f32 %v646_v44, %v645_v43 }
 0x45c   :  { %v651_v57 = vrot.slane %v650_v54, 2 }
 0x45e   :  { %v652_v49 = vadd.f32 %v651_v57, %v650_v54 }
 0x460   :  { %v653_v56 = vrot.slane %v652_v49, 1 }
 0x462   :  { %v654_v46 = vadd.f32 %v653_v56, %v652_v49 }
 0x464   :  { %v657_v47 = vsel %vm556_vm7, %v654_v46, %v647_v45 }
 0x465   :  { %659 = vst [vmem:[%s1200_s6] sm:$0x3] %v657_v47 }

</bundles_post_ra>
